<compile_context>
chip_gen: v7x
topology: tpu7x:2x2x1
jax: 0.10.0
libtpu: 0.0.40
codegen_flags: <defaults>
</compile_context>

<pallas_src>
import functools

import jax
import jax.numpy as jnp
from jax.experimental import pallas as pl
from jax.experimental.pallas import tpu as pltpu

IN_PAD = 128   # contraction (feature-in) dim padded to full lane width
OUT_PAD = 128  # output dim padded to full lane width


def linear_kernel(x_ref, w_ref, b_ref, o_ref):
    # Single MXU pass (f32 accumulate), bias add on the VPU, unmasked store.
    acc = jnp.dot(x_ref[...], w_ref[...], preferred_element_type=jnp.float32)
    o_ref[...] = (acc + b_ref[...]).astype(o_ref.dtype)


@functools.partial(jax.jit, static_argnames=("out_features",))
def linear_forward(x, w_t_pad, b_pad, out_features):
    """x: (B, IN) f32, w_t_pad: (IN_PAD, OUT_PAD), b_pad: (1, OUT_PAD) -> (B, out_features)."""
    B, in_f = x.shape
    in_pad, out_pad = w_t_pad.shape

    # Zero-pad the activation lanes once, inside the same jit/dispatch as the
    # kernel, so the kernel's x DMA is one contiguous lane-dense transfer.
    x_pad = jnp.zeros((B, in_pad), jnp.float32).at[:, :in_f].set(x)

    vmem = pltpu.MemorySpace.VMEM
    y_pad = pl.pallas_call(
        linear_kernel,
        out_shape=jax.ShapeDtypeStruct((B, out_pad), jnp.float32),
        in_specs=[
            pl.BlockSpec(memory_space=vmem),  # x_pad:    (B, 128)
            pl.BlockSpec(memory_space=vmem),  # w_t_pad:  (128, 128)
            pl.BlockSpec(memory_space=vmem),  # b_pad:    (1, 128)
        ],
        out_specs=pl.BlockSpec(memory_space=vmem),
    )(x_pad, w_t_pad, b_pad)

    # Slice back to the logical width; fused into the same jit, no extra
    # dispatch.  (Downstream consumers could equally keep the padded layout.)
    return y_pad[:, :out_features]


class DataParalleModelPallas:
    """JAX/Pallas port of the PyTorch DataParalleModel (a single Linear(10, 20))."""

    def __init__(self, key):
        in_f, out_f = 10, 20
        self.out_features = out_f
        k_w, k_b = jax.random.split(key)
        # Deterministic init mirroring nn.Linear's default U(-1/sqrt(in), 1/sqrt(in)).
        bound = 1.0 / jnp.sqrt(jnp.float32(in_f))
        w = jax.random.uniform(k_w, (out_f, in_f), jnp.float32, -bound, bound)
        b = jax.random.uniform(k_b, (out_f,), jnp.float32, -bound, bound)
        # Logical (unpadded) params, used for the reference check.
        self.w_t = jnp.transpose(w)  # (IN, OUT)
        self.b = b                   # (OUT,)
        # One-time zero-pad to a fully lane-dense (128, 128)/(1, 128) layout.
        self.w_t_pad = (
            jnp.zeros((IN_PAD, OUT_PAD), jnp.float32).at[:in_f, :out_f].set(self.w_t)
        )
        self.b_pad = jnp.zeros((1, OUT_PAD), jnp.float32).at[:, :out_f].set(b)

    def __call__(self, x):
        return linear_forward(x, self.w_t_pad, self.b_pad, self.out_features)


if __name__ == "__main__":
    key = jax.random.PRNGKey(0)
    k_model, k_x = jax.random.split(key)

    model = DataParalleModelPallas(k_model)
    # torch.rand(16, 10) equivalent: uniform [0, 1) input of shape (16, 10).
    x = jax.random.uniform(k_x, (16, 10), jnp.float32)

    y = jax.block_until_ready(model(x))

    # Sanity check against plain-JAX reference of the same forward.
    y_ref = x @ model.w_t + model.b
    assert y.shape == (16, 20)
    assert jnp.allclose(y, y_ref, atol=1e-5, rtol=1e-5)

    print("KERNEL_OK")
</pallas_src>

<mosaic_0001>
module attributes {stable_mosaic.version = 11 : i64} {
  func.func @linear_kernel(%arg0: memref<16x128xf32, #tpu.memory_space<vmem>>, %arg1: memref<128x128xf32, #tpu.memory_space<vmem>>, %arg2: memref<1x128xf32, #tpu.memory_space<vmem>>, %arg3: memref<16x128xf32, #tpu.memory_space<vmem>>) attributes {dimension_semantics = [], scalar_prefetch = 0 : i64, scratch_operands = 0 : i64, tpu.core_type = #tpu.core_type<tc>} {
    %c0 = arith.constant 0 : index
    %c0_0 = arith.constant 0 : index
    %0 = vector.load %arg0[%c0, %c0_0] : memref<16x128xf32, #tpu.memory_space<vmem>>, vector<16x128xf32>
    %c0_1 = arith.constant 0 : index
    %c0_2 = arith.constant 0 : index
    %1 = vector.load %arg1[%c0_1, %c0_2] : memref<128x128xf32, #tpu.memory_space<vmem>>, vector<128x128xf32>
    %cst = arith.constant dense<0.000000e+00> : vector<16x128xf32>
    %2 = tpu.matmul %0, %1, %cst {dimension_numbers = #tpu.dot_dimension_numbers<[1], [0], [0], [1], [0, 0, 1, 1], [], []>} : vector<16x128xf32>, vector<128x128xf32>, vector<16x128xf32> -> vector<16x128xf32>
    %c0_3 = arith.constant 0 : index
    %c0_4 = arith.constant 0 : index
    %3 = vector.load %arg2[%c0_3, %c0_4] : memref<1x128xf32, #tpu.memory_space<vmem>>, vector<1x128xf32>
    %4 = vector.broadcast %3 : vector<1x128xf32> to vector<16x128xf32>
    %5 = arith.addf %2, %4 : vector<16x128xf32>
    %c0_5 = arith.constant 0 : index
    %c0_6 = arith.constant 0 : index
    %6 = vector.load %arg3[%c0_5, %c0_6] : memref<16x128xf32, #tpu.memory_space<vmem>>, vector<16x128xf32>
    tpu.vector_store %arg3[%c0_5, %c0_6], %5 {strides = array<i32>} : memref<16x128xf32, #tpu.memory_space<vmem>>, vector<16x128xf32>,
    return
  }
}

</mosaic_0001>

<bundles_post_ra>
// kernel: linear_forward.1
= control target key start
LH: loop header
LB: loop body
LE: loop exit
PB: predicated region body
PF: predicated region fallthrough
CT: control target
= control target key end

     0   :  { %8 = vsyncpa [#allocation3], 0  ;;  %s349_s0 = inlined_call_operand.vmem [shape: f32[16,128], index: 0, kind: input, shape index: {}]   ;;  %s350_s1 = inlined_call_operand.hbm [shape: f32[128,128], index: 1, kind: input, shape index: {}]   ;;  %s351_s2 = inlined_call_operand.vmem [shape: f32[1,128], index: 2, kind: input, shape index: {}]   ;;  %s352_s3 = inlined_call_operand.hbm [shape: f32[16,128], index: 3, kind: output, shape index: {}]  }
   0x1   :  { %9 = vsyncpa [#allocation4], 0  ;;  %s286_s12 = smov [#allocation2]   ;;  %s238_s16 = scalar_lea.hbm %s350_s1, 2048 }
   0x2   :  { %s17_s13 = sshll.u32 %s286_s12, 4  ;;  %p239_p0 = scmp.ne.s32.totalorder %s350_s1, %s238_s16  ;;  %s18_s13 = int_to_ptr.vmem [resolvable:$true] %s17_s13 }
   0x3   :  { %p242_p1 = scmp.lt.u32.totalorder %s238_s16, %s350_s1 }
   0x5   :  { %p244_p2 = pnand %p242_p1, %p239_p0 }
   0x7   :  { %247 = shalt.err (!%p244_p2)
}
   0x8   :  { %s248_s21 = scalar_lea.vmem %s18_s13, 2048  ;;  %p253_p4 = scmp.lt.s32.totalorder %s18_s13, %s18_s13 }
   0x9   :  { %p249_p3 = scmp.ne.s32.totalorder %s18_s13, %s248_s21  ;;  %p254_p5 = scmp.lt.s32.totalorder %s248_s21, %s248_s21 }
   0xb   :  { %p255_p6 = por %p254_p5, %p253_p4 }
   0xd   :  { %p256_p7 = pnand %p255_p6, %p249_p3 }
   0xf   :  { %259 = shalt.err (!%p256_p7)
}
  0x10   :  { %s287_s22 = smov 128   ;;  %s288_s23 = smov 8  }
  0x11   :  { %23 = dma.hbm_to_vmem [thread:$0]  %s350_s1, 2048, %s18_s13, [#allocation3], %s287_s22, %s287_s22, %s288_s23  }
  0x12   :  { %282 = dma.done.wait [#allocation3], 2048  }
  0x13   :  { %283 = vsyncadd [#allocation3], 4294965248  ;;  %v31_v0 = vld [vmem:[#allocation2] sm:$0xff]  ;;  %v32_v1 = vld [vmem:[#allocation2 + $0x8] sm:$0xff]  ;;  %s289_s4 = smov [#allocation5]  }
  0x14   :  { %v33_v2 = vld [vmem:[#allocation2 + $0x10] sm:$0xff]  ;;  %v202_v3 = vpack.c.bf16 %v32_v1, %v31_v0  ;;  %v34_v4 = vld [vmem:[#allocation2 + $0x18] sm:$0xff]  ;;  %v35_v6 = vld [vmem:[#allocation2 + $0x20] sm:$0xff]  ;;  %s136_s5 = sshll.u32 %s289_s4, 4  ;;  %s137_s5 = int_to_ptr.vmem [resolvable:$true] %s136_s5 }
  0x15   :  { %v206_v5 = vpack.c.bf16 %v34_v4, %v33_v2  ;;  %v36_v7 = vld [vmem:[#allocation2 + $0x28] sm:$0xff]  ;;  %v29_v9 = vld [vmem:[%s349_s0] sm:$0xff]  ;;  %v37_v10 = vld [vmem:[#allocation2 + $0x30] sm:$0xff]  ;;  %s260_s6 = scalar_lea.vmem %s137_s5, 256  ;;  %p265_p9 = scmp.lt.s32.totalorder %s137_s5, %s137_s5 }
  0x16   :  { %203 = vmatprep.subr.bf16.mxu0 %v202_v3  ;;  %v210_v8 = vpack.c.bf16 %v36_v7, %v35_v6  ;;  %v38_v11 = vld [vmem:[#allocation2 + $0x38] sm:$0xff]  ;;  %199 = vmatprep.mubr.f32.mxu0 %v29_v9  ;;  %v39_v13 = vld [vmem:[#allocation2 + $0x40] sm:$0xff]  ;;  %v40_v14 = vld [vmem:[#allocation2 + $0x48] sm:$0xff]  ;;  %p261_p8 = scmp.ne.s32.totalorder %s137_s5, %s260_s6  ;;  %p266_p10 = scmp.lt.s32.totalorder %s260_s6, %s260_s6 }
  0x17   :  { %205 = vmatpush3.bf16.msra.mxu0 %v202_v3  ;;  %v214_v12 = vpack.c.bf16 %v38_v11, %v37_v10  ;;  %v218_v15 = vpack.c.bf16 %v40_v14, %v39_v13  ;;  %v41_v16 = vld [vmem:[#allocation2 + $0x50] sm:$0xff]  ;;  %v42_v17 = vld [vmem:[#allocation2 + $0x58] sm:$0xff]  ;;  %v43_v19 = vld [vmem:[#allocation2 + $0x60] sm:$0xff] }
  0x18   :  { %207 = vmatprep.subr.bf16.mxu0 %v206_v5  ;;  %v222_v18 = vpack.c.bf16 %v42_v17, %v41_v16  ;;  %v44_v20 = vld [vmem:[#allocation2 + $0x68] sm:$0xff]  ;;  %v45_v22 = vld [vmem:[#allocation2 + $0x70] sm:$0xff]  ;;  %v46_v23 = vld [vmem:[#allocation2 + $0x78] sm:$0xff]  ;;  %p267_p11 = por %p266_p10, %p265_p9 }
  0x19   :  { %v226_v21 = vpack.c.bf16 %v44_v20, %v43_v19  ;;  %v230_v24 = vpack.c.bf16 %v46_v23, %v45_v22  ;;  %v30_v25 = vld [vmem:[%s349_s0 + $0x8] sm:$0xff]  ;;  %v148_v26 = vld [vmem:[%s351_s2] ss:$0 sm:$0xff] }
  0x1a   :  { %p268_p12 = pnand %p267_p11, %p261_p8 }
  0x1b   :  { %209 = vmatpush3.bf16.msra.mxu0 %v206_v5 }
  0x1c   :  { %211 = vmatprep.subr.bf16.mxu0 %v210_v8 }
  0x1f   :  { %213 = vmatpush3.bf16.msra.mxu0 %v210_v8 }
  0x20   :  { %215 = vmatprep.subr.bf16.mxu0 %v214_v12 }
  0x23   :  { %217 = vmatpush3.bf16.msra.mxu0 %v214_v12 }
  0x24   :  { %219 = vmatprep.subr.bf16.mxu0 %v218_v15 }
  0x27   :  { %221 = vmatpush3.bf16.msra.mxu0 %v218_v15 }
  0x28   :  { %223 = vmatprep.subr.bf16.mxu0 %v222_v18 }
  0x2b   :  { %225 = vmatpush3.bf16.msra.mxu0 %v222_v18 }
  0x2c   :  { %227 = vmatprep.subr.bf16.mxu0 %v226_v21 }
  0x2f   :  { %229 = vmatpush3.bf16.msra.mxu0 %v226_v21 }
  0x30   :  { %231 = vmatprep.subr.bf16.mxu0 %v230_v24 }
  0x33   :  { %233 = vmatpush3.bf16.msra.mxu0 %v230_v24 }
  0x36   :  { %200 = vmatmul.mubr.f32.vlgmr.msra.gmra.mrb[0].mxu0 %v30_v25 }
 0x109   :  { %v201_v27 = vpop.f32.mrb[0].mxu0 }
 0x10a   :  { %v126_v28 = vadd.f32 %v201_v27, %v148_v26  ;;  %v120_v29 = vpop.f32.mrb[1].mxu0 }
 0x10b   :  { %v121_v30 = vadd.f32 %v148_v26, %v120_v29 }
 0x10c   :  { %130 = vst [vmem:[#allocation5 + $0x8] sm:$0xff] %v126_v28 }
 0x10d   :  { %129 = vst [vmem:[#allocation5] sm:$0xff] %v121_v30 }
 0x10e   :  { %271 = shalt.err (!%p268_p12)
}
 0x10f   :  { %s272_s2 = scalar_lea.hbm %s352_s3, 256 }
 0x110   :  { %p273_p13 = scmp.ne.s32.totalorder %s352_s3, %s272_s2  ;;  %p276_p0 = scmp.lt.u32.totalorder %s272_s2, %s352_s3 }
 0x112   :  { %p278_p1 = pnand %p276_p0, %p273_p13 }
 0x114   :  { %281 = shalt.err (!%p278_p1)
}
 0x115   :  { %142 = dma.vmem_to_hbm [thread:$0]  %s137_s5, 256, %s352_s3, [#allocation4], %s287_s22, %s287_s22, %s288_s23  }
 0x116   :  { %284 = dma.done.wait [#allocation4], 256  }
 0x117   :  { %285 = vsyncadd [#allocation4], 4294967040 }
 0x118   :  { %146 = vsyncpa [#allocation3], 1 }
 0x119   :  { %147 = vsyncpa [#allocation4], 1 }

</bundles_post_ra>
